<compile_context>
chip_gen: v6e
topology: v6e:2x2x1
jax: 0.10.0
libtpu: 0.0.40
codegen_flags: <defaults>
</compile_context>

<pallas_src>
import math

import jax
import jax.numpy as jnp
from jax import lax
from jax.experimental import pallas as pl
from jax.experimental.pallas import tpu as pltpu

_KN = (((1,), (0,)), ((), ()))      # contract lhs last dim with rhs first dim: x @ W_t
_BN_EPS = 1e-5                      # PyTorch BatchNorm1d default eps
_FP_EPS = 1e-8                      # PointNetFeaturePropagation eps
_VMEM_LIMIT = 56 * 1024 * 1024      # explicit scoped-VMEM limit (fits v7x's 64 MiB physical)
_VMEM_BUDGET = 40 * 1024 * 1024     # budget used to size the query tile


def _round_up(x, m):
    return ((x + m - 1) // m) * m


def _bn_affine_folded(gamma, beta, mean, var, bias, eps=_BN_EPS):
    """Fold inference-mode BatchNorm AND the linear bias into per-channel scale/shift."""
    scale = gamma / jnp.sqrt(var + eps)
    shift = (bias - mean) * scale + beta
    return scale, shift


def _pad_out_features(w, scale, shift, d_out_p):
    """Pad linear out-features + affine to a lane-dense multiple of 128 (padded lanes -> 0)."""
    d_out = w.shape[0]
    if d_out_p == d_out:
        return w, scale, shift
    pad = d_out_p - d_out
    return (jnp.pad(w, ((0, pad), (0, 0))),
            jnp.pad(scale, ((0, pad),)),
            jnp.pad(shift, ((0, pad),)))


def _pick_query_tile(n2, n1, dim2, d_out_p, budget=_VMEM_BUDGET):
    """Largest query tile fitting the VMEM budget, aligned to the MXU M tile when large."""
    # ~6 f32 (tq, N1) temporaries + double-buffered per-tile query xyz / points2 / output.
    per_row = 6 * n1 * 4 + 2 * (3 + dim2 + d_out_p) * 4
    # single-buffered resident feats1 (bf16) + source xyz + fc2 weight + slack.
    fixed = n1 * d_out_p * 2 + 3 * n1 * 4 + dim2 * d_out_p * 4 + (2 << 20)
    tq = max(8, (budget - fixed) // per_row)
    if tq >= 256:
        tq = min((tq // 256) * 256, 1024)
    else:
        tq = max(8, (tq // 8) * 8)
    return max(8, min(tq, _round_up(n2, 8)))


# ----------------------------------------------------------------------------
# Kernel A: Linear + folded BatchNorm affine + ReLU, tiled over rows, bf16 out.
# ----------------------------------------------------------------------------
def _proj_bn_relu_kernel(x_ref, wt_ref, scale_ref, shift_ref, o_ref):
    y = lax.dot_general(x_ref[...], wt_ref[...], _KN,
                        preferred_element_type=jnp.float32)
    y = y * scale_ref[...] + shift_ref[...]
    o_ref[...] = jnp.maximum(y, 0.0).astype(o_ref.dtype)


def _proj_bn_relu(x2d, w_t, scale, shift, *, row_tile=1024, out_dtype=jnp.bfloat16):
    rows, d_in = x2d.shape
    d_out = w_t.shape[1]
    tm = min(row_tile, _round_up(rows, 8))
    rows_p = _round_up(rows, tm)
    if rows_p != rows:
        x2d = jnp.pad(x2d, ((0, rows_p - rows), (0, 0)))
    out = pl.pallas_call(
        _proj_bn_relu_kernel,
        grid=(rows_p // tm,),
        in_specs=[
            pl.BlockSpec((tm, d_in), lambda i: (i, 0)),
            pl.BlockSpec((d_in, d_out), lambda i: (0, 0)),   # pre-transposed (K, N) weight
            pl.BlockSpec((1, d_out), lambda i: (0, 0)),
            pl.BlockSpec((1, d_out), lambda i: (0, 0)),
        ],
        out_specs=pl.BlockSpec((tm, d_out), lambda i: (i, 0)),
        out_shape=jax.ShapeDtypeStruct((rows_p, d_out), out_dtype),
        compiler_params=pltpu.CompilerParams(
            dimension_semantics=("parallel",),
            vmem_limit_bytes=_VMEM_LIMIT),
    )(x2d, w_t, scale[None, :], shift[None, :])
    return out[:rows]


# ----------------------------------------------------------------------------
# Kernel B: fused fc2 projection + 3-NN inverse-distance interpolation + residual add.
# ----------------------------------------------------------------------------
def _upsample_kernel(xyzq_ref, xyzs_ref, f1_ref, p2_ref,
                     w2t_ref, sc2_ref, sh2_ref, o_ref):
    # fc2 branch: ReLU(BN2(Linear2(points2_tile)))           -> (TQ, d_out_p)
    f2 = lax.dot_general(p2_ref[0], w2t_ref[...], _KN,
                         preferred_element_type=jnp.float32)
    f2 = jnp.maximum(f2 * sc2_ref[...] + sh2_ref[...], 0.0)

    # squared distances: ||q||^2 + ||s||^2 - 2 q.s ; cross term on the MXU (VPU is the
    # bottleneck here), exact f32 passes, clamped at 0 against cancellation.
    q = xyzq_ref[0]                                          # (TQ, 3)
    s_t = xyzs_ref[0]                                        # (3, N1), lane-dense
    qn = jnp.sum(q * q, axis=-1, keepdims=True)              # (TQ, 1)
    sn = jnp.sum(s_t * s_t, axis=0, keepdims=True)           # (1, N1)
    cross = lax.dot_general(q, s_t, _KN,
                            preferred_element_type=jnp.float32,
                            precision=lax.Precision.HIGHEST)
    d = jnp.maximum(qn + sn - 2.0 * cross, 0.0)              # (TQ, N1)

    # 3-NN inverse-distance weights as a dense (TQ, N1) matrix (<=3 nonzeros per row).
    # Lowest-index tie-break == stable sort semantics; n_src < 3 degrades gracefully
    # (extra picks get weight 1/inf = 0), matching PyTorch's [..., :3] behaviour.
    tq, n_src = d.shape
    col = lax.broadcasted_iota(jnp.int32, (tq, n_src), 1)
    wmat = jnp.zeros((tq, n_src), jnp.float32)
    wsum = jnp.zeros((tq, 1), jnp.float32)
    for _ in range(3):
        mv = jnp.min(d, axis=-1, keepdims=True)                              # (TQ, 1)
        idx = jnp.min(jnp.where(d <= mv, col, n_src), axis=-1, keepdims=True)
        onehot = col == idx
        recip = 1.0 / (mv + _FP_EPS)
        wmat = jnp.where(onehot, wmat + recip, wmat)
        wsum = wsum + recip
        d = jnp.where(onehot, jnp.inf, d)

    # interpolation = (W @ feats1) / row_sum : one bf16 MXU matmul, f32 accumulation,
    # normalization reciprocal on the EUP slot.
    interp = lax.dot_general(wmat.astype(f1_ref.dtype), f1_ref[0], _KN,
                             preferred_element_type=jnp.float32)             # (TQ, d_out_p)
    interp = interp * pl.reciprocal(wsum, approx=True)

    o_ref[0] = (interp + f2).astype(o_ref.dtype)


# ----------------------------------------------------------------------------
# Wrapper
# ----------------------------------------------------------------------------
def transition_up(xyz1, points1, xyz2, points2, params, *, query_tile=None):
    """xyz1/points1: coarse level (B,N1,3)/(B,N1,dim1); xyz2/points2: fine level."""
    B, N1, _ = xyz1.shape
    _, N2, _ = xyz2.shape
    dim1 = points1.shape[-1]
    dim2 = points2.shape[-1]
    d_out = params["w1"].shape[0]
    d_out_p = _round_up(d_out, 128)               # lane-dense stores / full MXU N

    sc1, sh1 = _bn_affine_folded(params["bn1_gamma"], params["bn1_beta"],
                                 params["bn1_mean"], params["bn1_var"], params["b1"])
    sc2, sh2 = _bn_affine_folded(params["bn2_gamma"], params["bn2_beta"],
                                 params["bn2_mean"], params["bn2_var"], params["b2"])

    w1p, sc1p, sh1p = _pad_out_features(params["w1"], sc1, sh1, d_out_p)
    w2p, sc2p, sh2p = _pad_out_features(params["w2"], sc2, sh2, d_out_p)
    w1t = jnp.transpose(w1p)                      # (dim1, d_out_p): MXU-preferred RHS layout
    w2t = jnp.transpose(w2p)                      # (dim2, d_out_p)

    # fc1 on the coarse features (interpolation sources), row-tiled & pipelined, bf16 out.
    feats1 = _proj_bn_relu(points1.reshape(B * N1, dim1), w1t, sc1p, sh1p)
    feats1 = feats1.reshape(B, N1, d_out_p)

    # fused fc2 + 3-NN interpolation + residual add, tiled over (batch, query rows)
    tq = query_tile if query_tile is not None else _pick_query_tile(N2, N1, dim2, d_out_p)
    tq = max(8, min(tq, _round_up(N2, 8)))
    n2p = _round_up(N2, tq)
    xyz_q, p2 = xyz2, points2
    if n2p != N2:
        pad = ((0, 0), (0, n2p - N2), (0, 0))
        xyz_q = jnp.pad(xyz_q, pad)
        p2 = jnp.pad(p2, pad)
    xyz_s_t = jnp.transpose(xyz1, (0, 2, 1))      # (B, 3, N1): lane-dense source xyz

    def _call(single_buffer_resident):
        def resident(shape):
            # block index only changes once per batch -> single buffer saves VMEM
            if single_buffer_resident:
                return pl.BlockSpec(shape, lambda b, i: (b, 0, 0),
                                    pipeline_mode=pl.Buffered(1))
            return pl.BlockSpec(shape, lambda b, i: (b, 0, 0))

        return pl.pallas_call(
            _upsample_kernel,
            grid=(B, n2p // tq),
            in_specs=[
                pl.BlockSpec((1, tq, 3), lambda b, i: (b, i, 0)),      # query xyz tile
                resident((1, 3, N1)),                                  # source xyz (per batch)
                resident((1, N1, d_out_p)),                            # feats1 bf16 (per batch)
                pl.BlockSpec((1, tq, dim2), lambda b, i: (b, i, 0)),   # points2 tile
                pl.BlockSpec((dim2, d_out_p), lambda b, i: (0, 0)),    # fc2 weight (K, N)
                pl.BlockSpec((1, d_out_p), lambda b, i: (0, 0)),       # bn2 scale
                pl.BlockSpec((1, d_out_p), lambda b, i: (0, 0)),       # bn2 shift (+bias)
            ],
            out_specs=pl.BlockSpec((1, tq, d_out_p), lambda b, i: (b, i, 0)),
            out_shape=jax.ShapeDtypeStruct((B, n2p, d_out_p), jnp.float32),
            compiler_params=pltpu.CompilerParams(
                dimension_semantics=("parallel", "parallel"),
                vmem_limit_bytes=_VMEM_LIMIT),
        )(xyz_q, xyz_s_t, feats1, p2, w2t, sc2p[None, :], sh2p[None, :])

    try:
        out = jax.block_until_ready(_call(True))
    except Exception:
        # Fallback if pipeline_mode=pl.Buffered(1) is rejected by this jax/Mosaic build.
        out = _call(False)
    return out[:, :N2, :d_out]


# ----------------------------------------------------------------------------
# Pure-JAX reference (mirrors the PyTorch forward) and parameter init
# ----------------------------------------------------------------------------
def _reference(xyz1, points1, xyz2, points2, params):
    def proj(x, w, b, g, be, m, v):
        y = x @ w.T + b
        y = (y - m) / jnp.sqrt(v + _BN_EPS) * g + be
        return jnp.maximum(y, 0.0)

    feats1 = proj(points1, params["w1"], params["b1"], params["bn1_gamma"],
                  params["bn1_beta"], params["bn1_mean"], params["bn1_var"])
    feats2 = proj(points2, params["w2"], params["b2"], params["bn2_gamma"],
                  params["bn2_beta"], params["bn2_mean"], params["bn2_var"])

    diff = xyz2[:, :, None, :] - xyz1[:, None, :, :]          # (B, N2, N1, 3)
    d = jnp.sum(diff * diff, axis=-1)
    k = min(3, xyz1.shape[1])
    idx = jnp.argsort(d, axis=-1)[..., :k]                    # (B, N2, k)
    dd = jnp.take_along_axis(d, idx, axis=-1)
    recip = 1.0 / (dd + _FP_EPS)
    w = recip / jnp.sum(recip, axis=-1, keepdims=True)
    gathered = jax.vmap(lambda f, i: f[i])(feats1, idx)       # (B, N2, k, d_out)
    interp = jnp.sum(gathered * w[..., None], axis=2)
    return interp + feats2


def init_params(key, dim1, dim2, d_out):
    def linear(k, out_f, in_f):
        kw, kb = jax.random.split(k)
        bound = 1.0 / math.sqrt(in_f)
        w = jax.random.uniform(kw, (out_f, in_f), jnp.float32, -bound, bound)
        b = jax.random.uniform(kb, (out_f,), jnp.float32, -bound, bound)
        return w, b

    def bn(k, n):
        kg, kb, km, kv = jax.random.split(k, 4)
        return dict(gamma=jax.random.uniform(kg, (n,), jnp.float32, 0.5, 1.5),
                    beta=jax.random.uniform(kb, (n,), jnp.float32, -0.5, 0.5),
                    mean=0.1 * jax.random.normal(km, (n,), jnp.float32),
                    var=jax.random.uniform(kv, (n,), jnp.float32, 0.5, 1.5))

    k1, k2, k3, k4 = jax.random.split(key, 4)
    p = {}
    p["w1"], p["b1"] = linear(k1, d_out, dim1)
    p["w2"], p["b2"] = linear(k2, d_out, dim2)
    for name, v in bn(k3, d_out).items():
        p[f"bn1_{name}"] = v
    for name, v in bn(k4, d_out).items():
        p[f"bn2_{name}"] = v
    return p


if __name__ == "__main__":
    B, N1, N2 = 2, 8, 16                 # coarse points N1, fine points N2
    dim1, dim2, d_out = 32, 16, 32

    key = jax.random.PRNGKey(0)
    ks = jax.random.split(key, 5)
    xyz1 = jax.random.normal(ks[0], (B, N1, 3), jnp.float32)
    xyz2 = jax.random.normal(ks[1], (B, N2, 3), jnp.float32)
    points1 = jax.random.normal(ks[2], (B, N1, dim1), jnp.float32)
    points2 = jax.random.normal(ks[3], (B, N2, dim2), jnp.float32)
    params = init_params(ks[4], dim1, dim2, d_out)

    out = transition_up(xyz1, points1, xyz2, points2, params)
    jax.block_until_ready(out)

    assert out.shape == (B, N2, d_out), out.shape
    assert bool(jnp.all(jnp.isfinite(out))), "non-finite output"

    ref = _reference(xyz1, points1, xyz2, points2, params)
    max_err = float(jnp.max(jnp.abs(out - ref)))
    # tolerance accounts for the bf16 feats1 carry + bf16 interpolation matmul (f32 accum)
    assert bool(jnp.allclose(out, ref, atol=5e-2, rtol=5e-2)), f"max abs err {max_err}"
    print("KERNEL_OK")
</pallas_src>

<mosaic_0001>
module attributes {stable_mosaic.version = 11 : i64} {
  func.func @_proj_bn_relu_kernel(%arg0: i32, %arg1: memref<16x32xf32, #tpu.memory_space<vmem>>, %arg2: memref<32x128xf32, #tpu.memory_space<vmem>>, %arg3: memref<1x128xf32, #tpu.memory_space<vmem>>, %arg4: memref<1x128xf32, #tpu.memory_space<vmem>>, %arg5: memref<16x128xbf16, #tpu.memory_space<vmem>>) attributes {dimension_semantics = [#tpu.dimension_semantics<parallel>], iteration_bounds = array<i64: 1>, scalar_prefetch = 0 : i64, scratch_operands = 0 : i64, tpu.core_type = #tpu.core_type<tc>, window_params = [{transform_indices = @transform_0, window_bounds = array<i64: 16, 32>}, {pipeline_mode = #tpu.pipeline_mode<synchronous>, transform_indices = @transform_1, window_bounds = array<i64: 32, 128>}, {pipeline_mode = #tpu.pipeline_mode<synchronous>, transform_indices = @transform_2, window_bounds = array<i64: 1, 128>}, {pipeline_mode = #tpu.pipeline_mode<synchronous>, transform_indices = @transform_3, window_bounds = array<i64: 1, 128>}, {transform_indices = @transform_4, window_bounds = array<i64: 16, 128>}]} {
    %c0 = arith.constant 0 : index
    %c0_0 = arith.constant 0 : index
    %0 = vector.load %arg1[%c0, %c0_0] : memref<16x32xf32, #tpu.memory_space<vmem>>, vector<16x32xf32>
    %c0_1 = arith.constant 0 : index
    %c0_2 = arith.constant 0 : index
    %1 = vector.load %arg2[%c0_1, %c0_2] : memref<32x128xf32, #tpu.memory_space<vmem>>, vector<32x128xf32>
    %cst = arith.constant dense<0.000000e+00> : vector<16x128xf32>
    %2 = tpu.matmul %0, %1, %cst {dimension_numbers = #tpu.dot_dimension_numbers<[1], [0], [0], [1], [0, 0, 1, 1], [], []>} : vector<16x32xf32>, vector<32x128xf32>, vector<16x128xf32> -> vector<16x128xf32>
    %c0_3 = arith.constant 0 : index
    %c0_4 = arith.constant 0 : index
    %3 = vector.load %arg3[%c0_3, %c0_4] : memref<1x128xf32, #tpu.memory_space<vmem>>, vector<1x128xf32>
    %4 = vector.broadcast %3 : vector<1x128xf32> to vector<16x128xf32>
    %5 = arith.mulf %2, %4 : vector<16x128xf32>
    %c0_5 = arith.constant 0 : index
    %c0_6 = arith.constant 0 : index
    %6 = vector.load %arg4[%c0_5, %c0_6] : memref<1x128xf32, #tpu.memory_space<vmem>>, vector<1x128xf32>
    %7 = vector.broadcast %6 : vector<1x128xf32> to vector<16x128xf32>
    %8 = arith.addf %5, %7 : vector<16x128xf32>
    %cst_7 = arith.constant 0.000000e+00 : f32
    %9 = vector.broadcast %cst_7 : f32 to vector<16x128xf32>
    %10 = arith.maximumf %8, %9 : vector<16x128xf32>
    %11 = arith.truncf %10 : vector<16x128xf32> to vector<16x128xbf16>
    %c0_8 = arith.constant 0 : index
    %c0_9 = arith.constant 0 : index
    %12 = vector.load %arg5[%c0_8, %c0_9] : memref<16x128xbf16, #tpu.memory_space<vmem>>, vector<16x128xbf16>
    tpu.vector_store %arg5[%c0_8, %c0_9], %11 {strides = array<i32>} : memref<16x128xbf16, #tpu.memory_space<vmem>>, vector<16x128xbf16>,
    return
  }
  func.func @transform_0(%arg0: i32) -> (i32, i32) {
    %c0_i32 = arith.constant 0 : i32
    %c0_i32_0 = arith.constant 0 : i32
    return %arg0, %c0_i32 : i32, i32
  }
  func.func @transform_1(%arg0: i32) -> (i32, i32) {
    %c0_i32 = arith.constant 0 : i32
    %c0_i32_0 = arith.constant 0 : i32
    %c0_i32_1 = arith.constant 0 : i32
    return %c0_i32, %c0_i32_0 : i32, i32
  }
  func.func @transform_2(%arg0: i32) -> (i32, i32) {
    %c0_i32 = arith.constant 0 : i32
    %c0_i32_0 = arith.constant 0 : i32
    %c0_i32_1 = arith.constant 0 : i32
    return %c0_i32, %c0_i32_0 : i32, i32
  }
  func.func @transform_3(%arg0: i32) -> (i32, i32) {
    %c0_i32 = arith.constant 0 : i32
    %c0_i32_0 = arith.constant 0 : i32
    %c0_i32_1 = arith.constant 0 : i32
    return %c0_i32, %c0_i32_0 : i32, i32
  }
  func.func @transform_4(%arg0: i32) -> (i32, i32) {
    %c0_i32 = arith.constant 0 : i32
    %c0_i32_0 = arith.constant 0 : i32
    return %arg0, %c0_i32 : i32, i32
  }
}

</mosaic_0001>

<bundles_post_ra>
// kernel: tpu_custom_call.1
= control target key start
LH: loop header
LB: loop body
LE: loop exit
PB: predicated region body
PF: predicated region fallthrough
CT: control target
= control target key end

     0   :  { %9 = vsyncpa [#allocation3], 0  ;;  %s334_s0 = inlined_call_operand.hbm [shape: f32[16,32], index: 0, kind: input, shape index: {}]   ;;  %s335_s1 = inlined_call_operand.hbm [shape: f32[32,128], index: 1, kind: input, shape index: {}]   ;;  %s336_s2 = inlined_call_operand.vmem [shape: f32[1,128], index: 2, kind: input, shape index: {}]   ;;  %s337_s3 = inlined_call_operand.vmem [shape: f32[1,128], index: 3, kind: input, shape index: {}]   ;;  %s338_s4 = inlined_call_operand.hbm [shape: bf16[16,128], index: 4, kind: output, shape index: {}]  }
   0x1   :  { %10 = vsyncpa [#allocation6], 0 }
   0x2   :  { %11 = vsyncpa [#allocation4], 0  ;;  %s285_s15 = smov [#allocation2]  }
   0x3   :  { %s17_s16 = sshll.u32 %s285_s15, 4  ;;  %s18_s16 = int_to_ptr.vmem [resolvable:$true] %s17_s16 }
   0x4   :  { %s227_s17 = scalar_lea.vmem %s18_s16, 256  ;;  %p232_p1 = scmp.lt.s32.totalorder %s18_s16, %s18_s16 }
   0x5   :  { %p228_p0 = scmp.ne.s32.totalorder %s18_s16, %s227_s17  ;;  %p233_p2 = scmp.lt.s32.totalorder %s227_s17, %s227_s17 }
   0x7   :  { %p234_p3 = por %p233_p2, %p232_p1 }
   0x9   :  { %p235_p4 = pnand %p234_p3, %p228_p0 }
   0xb   :  { %238 = shalt.err (!%p235_p4)
}
   0xc   :  { %s286_s18 = smov 128   ;;  %s287_s19 = smov 8  }
   0xd   :  { %23 = dma.hbm_to_vmem [thread:$0]  %s334_s0, 256, %s18_s16, [#allocation3], %s286_s18, %s286_s18, %s287_s19  }
   0xe   :  { %s288_s22 = smov [#allocation5]  }
   0xf   :  { %s29_s23 = sshll.u32 %s288_s22, 4  ;;  %s30_s23 = int_to_ptr.vmem [resolvable:$true] %s29_s23 }
  0x10   :  { %s247_s24 = scalar_lea.vmem %s30_s23, 512  ;;  %p252_p6 = scmp.lt.s32.totalorder %s30_s23, %s30_s23 }
  0x11   :  { %p248_p5 = scmp.ne.s32.totalorder %s30_s23, %s247_s24  ;;  %p253_p7 = scmp.lt.s32.totalorder %s247_s24, %s247_s24 }
  0x13   :  { %p254_p8 = por %p253_p7, %p252_p6 }
  0x15   :  { %p255_p9 = pnand %p254_p8, %p248_p5 }
  0x17   :  { %258 = shalt.err (!%p255_p9)
}
  0x18   :  { %35 = dma.hbm_to_vmem [thread:$0]  %s335_s1, 512, %s30_s23, [#allocation6], %s286_s18, %s286_s18, %s287_s19  }
  0x19   :  { %279 = dma.done.wait [#allocation3], 256  }
  0x1a   :  { %280 = vsyncadd [#allocation3], 4294967040 }
  0x1b   :  { %281 = dma.done.wait [#allocation6], 512  }
  0x1c   :  { %282 = vsyncadd [#allocation6], 4294966784  ;;  %vm52_vm0 = vcmask 261120   ;;  %v51_v0 = vld [vmem:[#allocation5 + $0x18] sm:$0xff]  ;;  %v50_v1 = vld [vmem:[#allocation5 + $0x10] sm:$0xff]  ;;  %s289_s29 = smov [#allocation7]  }
  0x1d   :  { %201 = vmatprep.subr.mxu0 %v51_v0  ;;  %v46_v2 = vld [vmem:[#allocation2] sm:$0xff]  ;;  %v49_v3 = vld [vmem:[#allocation5 + $0x8] sm:$0xff]  ;;  %v48_v4 = vld [vmem:[#allocation5] sm:$0xff]  ;;  %s169_s30 = sshll.u32 %s289_s29, 4  ;;  %s170_s30 = int_to_ptr.vmem [resolvable:$true] %s169_s30 }
  0x1e   :  { %202 = vmatpush3.msra.mxu0 %v51_v0  ;;  %209 = vmatprep.mubr.msk.f32.mxu0 %vm52_vm0, %v46_v2  ;;  %v47_v5 = vld [vmem:[#allocation2 + $0x8] sm:$0xff]  ;;  %v184_v6 = vld [vmem:[%s336_s2] ss:$0 sm:$0xff]  ;;  %s259_s5 = scalar_lea.vmem %s170_s30, 128  ;;  %p264_p11 = scmp.lt.s32.totalorder %s170_s30, %s170_s30 }
  0x1f   :  { %203 = vmatprep.subr.mxu0 %v50_v1  ;;  %v185_v8 = vld [vmem:[%s337_s3] ss:$0 sm:$0xff]  ;;  %p260_p10 = scmp.ne.s32.totalorder %s170_s30, %s259_s5  ;;  %p265_p12 = scmp.lt.s32.totalorder %s259_s5, %s259_s5 }
  0x20   :  { %204 = vmatpush3.msra.mxu0 %v50_v1 }
  0x21   :  { %205 = vmatprep.subr.mxu0 %v49_v3  ;;  %p266_p13 = por %p265_p12, %p264_p11 }
  0x22   :  { %206 = vmatpush3.msra.mxu0 %v49_v3 }
  0x23   :  { %207 = vmatprep.subr.mxu0 %v48_v4  ;;  %p267_p0 = pnand %p266_p13, %p260_p10 }
  0x24   :  { %208 = vmatpush3.msra.mxu0 %v48_v4 }
  0x25   :  { %210 = vmatmul.mubr.msk.f32.vlgmr.msra.gmra.mxu0 %vm52_vm0, %v47_v5 }
  0xe5   :  { %v211_v7 = vpop.f32.mrf.mxu0 }
  0xe6   :  { %v142_v9 = vmul.f32 %v211_v7, %v184_v6 }
  0xe7   :  { %v125_v10 = vpop.f32.mrf.mxu0 }
  0xe8   :  { %v151_v11 = vadd.f32 %v185_v8, %v142_v9  ;;  %v141_v12 = vmul.f32 %v184_v6, %v125_v10 }
  0xea   :  { %v150_v13 = vadd.f32 %v185_v8, %v141_v12  ;;  %v153_v14 = vmax.f32 %v151_v11, 0.0 }
  0xec   :  { %v152_v15 = vmax.f32 %v150_v13, 0.0 }
  0xee   :  { %v193_v16 = vpack.c.bf16 %v153_v14, %v152_v15 }
  0xf0   :  { %194 = vst [vmem:[#allocation7] sm:$0xff] %v193_v16  }
  0xf1   :  { %270 = shalt.err (!%p267_p0)
}
  0xf2   :  { %s290_s2 = smov 64   ;;  %s291_s3 = smov 4  }
  0xf3   :  { %175 = dma.vmem_to_hbm [thread:$0]  %s170_s30, 128, %s338_s4, [#allocation4], %s290_s2, %s290_s2, %s291_s3  }
  0xf4   :  { %283 = dma.done.wait [#allocation4], 128  }
  0xf5   :  { %284 = vsyncadd [#allocation4], 4294967168 }
  0xf6   :  { %179 = vsyncpa [#allocation3], 1 }
  0xf7   :  { %180 = vsyncpa [#allocation6], 1 }
  0xf8   :  { %181 = vsyncpa [#allocation4], 1 }

</bundles_post_ra>
